<compile_context>
chip_gen: v7x
topology: tpu7x:2x2x1
jax: 0.10.0
libtpu: 0.0.40
codegen_flags: <defaults>
</compile_context>

<pallas_src>
import functools

import jax
import jax.numpy as jnp
from jax import lax
from jax.experimental import pallas as pl
from jax.experimental.pallas import tpu as pltpu

TEMPERATURE = 0.92
EPS = 1e-6


def _round_up(x, m):
    return ((x + m - 1) // m) * m


def _infonce_kernel(q_ref, p_ref, n_ref, loss_ref, acc_ref, qbf_ref, *,
                    num_neg, num_neg_padded, tile_m, inv_temperature):
    j = pl.program_id(1)
    nj = pl.num_programs(1)

    @pl.when(j == 0)
    def _init():
        acc_ref[...] = jnp.zeros_like(acc_ref)
        # Normalize q once per i-tile, fold 1/T, cache bf16 MXU operand.
        q = q_ref[...]                                              # (TN, D) f32
        q_inv = lax.rsqrt(jnp.maximum(jnp.sum(q * q, axis=-1, keepdims=True),
                                      EPS * EPS))                   # (TN, 1)
        qbf_ref[...] = (q * (q_inv * inv_temperature)).astype(qbf_ref.dtype)

    # bf16 MXU matmul, f32 accumulate; negatives arrive pre-normalized as
    # a lane-dense (D, TM) bf16 tile, so this is a natural (m,k)x(k,n) feed.
    neg_logits = lax.dot_general(
        qbf_ref[...], n_ref[...],
        dimension_numbers=(((1,), (0,)), ((), ())),
        preferred_element_type=jnp.float32)                         # (TN, TM) = cos/T

    e = jnp.exp(neg_logits)                                         # (TN, TM) f32
    # Lane-dense accumulation: VALU adds over tm/128 column groups; the
    # 128->1 cross-lane (XLU) reduce only happens at finalize.
    partial = e[:, 0:128]
    for g in range(1, tile_m // 128):
        partial = partial + e[:, g * 128:(g + 1) * 128]
    acc_ref[...] += partial                                         # (TN, 128)

    @pl.when(j == nj - 1)
    def _finalize():
        # Positive logit stays on a pure-f32 path (once per i-tile).
        q = q_ref[...]
        p = p_ref[...]
        q_inv = lax.rsqrt(jnp.maximum(jnp.sum(q * q, axis=-1, keepdims=True),
                                      EPS * EPS))
        p_inv = lax.rsqrt(jnp.maximum(jnp.sum(p * p, axis=-1, keepdims=True),
                                      EPS * EPS))
        pos_logit = (jnp.sum((q * q_inv) * (p * p_inv), axis=-1, keepdims=True)
                     * inv_temperature)                             # (TN, 1)
        s1 = jnp.exp(pos_logit)
        # Padded negative columns are exact zeros -> each contributed exp(0)=1,
        # so one scalar subtraction replaces a per-step mask.
        neg_sum = (jnp.sum(acc_ref[...], axis=-1, keepdims=True)
                   - float(num_neg_padded - num_neg))
        s2 = neg_sum * (1.0 / num_neg)                              # mean over negatives
        # -log(s1 / (s1 + s2)) == log(s1 + s2) - pos_logit  (no divide)
        loss_ref[...] = (jnp.log(s1 + s2) - pos_logit).astype(loss_ref.dtype)


def info_nce_pallas(query, positive_key, negative_keys,
                    temperature=TEMPERATURE, tile_n=512, tile_m=2048):
    # Glue: squeeze singleton dim (matches .squeeze(1) in the reference).
    q = jnp.squeeze(query, axis=1).astype(jnp.float32)
    p = jnp.squeeze(positive_key, axis=1).astype(jnp.float32)
    n = jnp.squeeze(negative_keys, axis=1).astype(jnp.float32)

    N, D = q.shape
    M = n.shape[0]

    # tn multiple of 16 (bf16 sublane packing); for large N make sure the
    # "parallel" N axis has >= 2 tiles so both v7x TensorCores get work.
    tn = min(tile_n, _round_up(N, 16))
    if N >= 256 and _round_up(N, tn) // tn < 2:
        tn = _round_up((N + 1) // 2, 16)
    # tm multiple of 256 keeps MXU output passes unmasked on v6e/v7x.
    tm = min(tile_m, _round_up(M, 256))

    n_pad = _round_up(N, tn)
    m_pad = _round_up(M, tm)

    if n_pad != N:
        q = jnp.pad(q, ((0, n_pad - N), (0, 0)))
        p = jnp.pad(p, ((0, n_pad - N), (0, 0)))

    # Pre-normalize negatives with f32 norms, transpose to lane-dense (D, M),
    # cast to bf16 (halves HBM traffic of the re-read negatives stream), and
    # zero-pad the M axis (padding handled by the finalize-time correction).
    n_inv = lax.rsqrt(jnp.maximum(jnp.sum(n * n, axis=-1, keepdims=True),
                                  EPS * EPS))
    n_hat_t = (n * n_inv).T.astype(jnp.bfloat16)                    # (D, M)
    if m_pad != M:
        n_hat_t = jnp.pad(n_hat_t, ((0, 0), (0, m_pad - M)))

    kernel = functools.partial(
        _infonce_kernel,
        num_neg=M, num_neg_padded=m_pad, tile_m=tm,
        inv_temperature=1.0 / temperature)

    per_row = pl.pallas_call(
        kernel,
        out_shape=jax.ShapeDtypeStruct((n_pad, 1), jnp.float32),
        grid_spec=pltpu.PrefetchScalarGridSpec(
            num_scalar_prefetch=0,
            grid=(n_pad // tn, m_pad // tm),
            in_specs=[
                pl.BlockSpec((tn, D), lambda i, j: (i, 0)),   # query tile (f32)
                pl.BlockSpec((tn, D), lambda i, j: (i, 0)),   # positive tile (f32)
                pl.BlockSpec((D, tm), lambda i, j: (0, j)),   # negatives^T tile (bf16)
            ],
            out_specs=pl.BlockSpec((tn, 1), lambda i, j: (i, 0)),
            scratch_shapes=[
                pltpu.VMEM((tn, 128), jnp.float32),           # lane-dense exp-sum acc
                pltpu.VMEM((tn, D), jnp.bfloat16),            # cached q_hat (1/T folded)
            ],
        ),
        compiler_params=pltpu.CompilerParams(
            dimension_semantics=("parallel", "arbitrary"),
            vmem_limit_bytes=48 * 1024 * 1024),
    )(q, p, n_hat_t)

    # Tiny final reduction over per-query losses stays outside the kernel.
    return jnp.mean(per_row[:N, 0]).reshape(1)


def _info_nce_ref(query, positive_key, negative_keys, temperature=TEMPERATURE):
    # Pure-JAX f32 reference mirroring the PyTorch module.
    q = jnp.squeeze(query, axis=1).astype(jnp.float32)
    p = jnp.squeeze(positive_key, axis=1).astype(jnp.float32)
    n = jnp.squeeze(negative_keys, axis=1).astype(jnp.float32)
    qn = jnp.linalg.norm(q, axis=-1, keepdims=True)
    pn = jnp.linalg.norm(p, axis=-1, keepdims=True)
    nn_ = jnp.linalg.norm(n, axis=-1, keepdims=True)
    cos_pos = jnp.sum(q * p, axis=-1, keepdims=True) / jnp.maximum(qn * pn, EPS)
    cos_neg = (q @ n.T) / jnp.maximum(qn * nn_.T, EPS)
    s1 = jnp.exp(cos_pos / temperature)
    s2 = jnp.mean(jnp.exp(cos_neg / temperature), axis=-1, keepdims=True)
    loss = -jnp.log(s1 / (s1 + s2))
    return jnp.mean(loss).reshape(1)


if __name__ == "__main__":
    key = jax.random.PRNGKey(0)
    k1, k2, k3, k4, k5, k6 = jax.random.split(key, 6)

    # Case 1: small aligned-ish shapes.
    N, M, D = 8, 8, 32
    query = jax.random.normal(k1, (N, 1, D), dtype=jnp.float32)
    positive_key = jax.random.normal(k2, (N, 1, D), dtype=jnp.float32)
    negative_keys = jax.random.normal(k3, (M, 1, D), dtype=jnp.float32)

    loss = info_nce_pallas(query, positive_key, negative_keys)
    jax.block_until_ready(loss)
    ref = _info_nce_ref(query, positive_key, negative_keys)
    assert loss.shape == (1,)
    # bf16 MXU matmul (f32 accumulate) vs pure-f32 reference -> loose tolerance.
    assert jnp.allclose(loss, ref, atol=2e-2, rtol=2e-2), (loss, ref)

    # Case 2: ragged shapes (exercises N/M padding + finalize-time correction).
    N2, M2 = 10, 12
    query2 = jax.random.normal(k4, (N2, 1, D), dtype=jnp.float32)
    positive_key2 = jax.random.normal(k5, (N2, 1, D), dtype=jnp.float32)
    negative_keys2 = jax.random.normal(k6, (M2, 1, D), dtype=jnp.float32)

    loss2 = info_nce_pallas(query2, positive_key2, negative_keys2)
    jax.block_until_ready(loss2)
    ref2 = _info_nce_ref(query2, positive_key2, negative_keys2)
    assert loss2.shape == (1,)
    assert jnp.allclose(loss2, ref2, atol=2e-2, rtol=2e-2), (loss2, ref2)

    print("KERNEL_OK")
</pallas_src>

<mosaic_0001>
module attributes {stable_mosaic.version = 11 : i64} {
  func.func @_infonce_kernel(%arg0: i32, %arg1: i32, %arg2: memref<16x32xf32, #tpu.memory_space<vmem>>, %arg3: memref<16x32xf32, #tpu.memory_space<vmem>>, %arg4: memref<32x256xbf16, #tpu.memory_space<vmem>>, %arg5: memref<16x1xf32, #tpu.memory_space<vmem>>, %arg6: memref<16x128xf32, #tpu.memory_space<vmem>>, %arg7: memref<16x32xbf16, #tpu.memory_space<vmem>>) attributes {dimension_semantics = [#tpu.dimension_semantics<parallel>, #tpu.dimension_semantics<arbitrary>], iteration_bounds = array<i64: 1, 1>, scalar_prefetch = 0 : i64, scratch_operands = 2 : i64, tpu.core_type = #tpu.core_type<tc>, window_params = [{transform_indices = @transform_0, window_bounds = array<i64: 16, 32>}, {transform_indices = @transform_1, window_bounds = array<i64: 16, 32>}, {transform_indices = @transform_2, window_bounds = array<i64: 32, 256>}, {transform_indices = @transform_3, window_bounds = array<i64: 16, 1>}]} {
    %c0_i32 = arith.constant 0 : i32
    %0 = arith.cmpi eq, %arg1, %c0_i32 : i32
    %1 = arith.extui %0 : i1 to i32
    %c0_i32_0 = arith.constant 0 : i32
    %2 = arith.cmpi ne, %1, %c0_i32_0 : i32
    scf.if %2 {
      %cst_10 = arith.constant 0.000000e+00 : f32
      %16 = vector.broadcast %cst_10 : f32 to vector<16x128xf32>
      %c0_11 = arith.constant 0 : index
      %c0_12 = arith.constant 0 : index
      %17 = vector.load %arg6[%c0_11, %c0_12] : memref<16x128xf32, #tpu.memory_space<vmem>>, vector<16x128xf32>
      tpu.vector_store %arg6[%c0_11, %c0_12], %16 {strides = array<i32>} : memref<16x128xf32, #tpu.memory_space<vmem>>, vector<16x128xf32>,
      %c0_13 = arith.constant 0 : index
      %c0_14 = arith.constant 0 : index
      %18 = vector.load %arg2[%c0_13, %c0_14] : memref<16x32xf32, #tpu.memory_space<vmem>>, vector<16x32xf32>
      %19 = arith.mulf %18, %18 : vector<16x32xf32>
      %cst_15 = arith.constant dense<0.000000e+00> : vector<16xf32>
      %20 = vector.multi_reduction <add>, %19, %cst_15 [1] : vector<16x32xf32> to vector<16xf32>
      %21 = vector.shape_cast %20 : vector<16xf32> to vector<16x1xf32>
      %cst_16 = arith.constant 9.99999996E-13 : f32
      %22 = vector.broadcast %cst_16 : f32 to vector<16x1xf32>
      %23 = arith.maximumf %21, %22 : vector<16x1xf32>
      %24 = math.rsqrt %23 : vector<16x1xf32>
      %cst_17 = arith.constant 1.0869565 : f32
      %25 = vector.broadcast %cst_17 : f32 to vector<16x1xf32>
      %26 = arith.mulf %24, %25 : vector<16x1xf32>
      %27 = vector.broadcast %26 : vector<16x1xf32> to vector<16x32xf32>
      %28 = arith.mulf %18, %27 : vector<16x32xf32>
      %29 = arith.truncf %28 : vector<16x32xf32> to vector<16x32xbf16>
      %c0_18 = arith.constant 0 : index
      %c0_19 = arith.constant 0 : index
      %30 = vector.load %arg7[%c0_18, %c0_19] : memref<16x32xbf16, #tpu.memory_space<vmem>>, vector<16x32xbf16>
      tpu.vector_store %arg7[%c0_18, %c0_19], %29 {strides = array<i32>} : memref<16x32xbf16, #tpu.memory_space<vmem>>, vector<16x32xbf16>,
    } else {
    }
    %c0 = arith.constant 0 : index
    %c0_1 = arith.constant 0 : index
    %3 = vector.load %arg7[%c0, %c0_1] : memref<16x32xbf16, #tpu.memory_space<vmem>>, vector<16x32xbf16>
    %c0_2 = arith.constant 0 : index
    %c0_3 = arith.constant 0 : index
    %4 = vector.load %arg4[%c0_2, %c0_3] : memref<32x256xbf16, #tpu.memory_space<vmem>>, vector<32x256xbf16>
    %cst = arith.constant dense<0.000000e+00> : vector<16x256xf32>
    %5 = tpu.matmul %3, %4, %cst {dimension_numbers = #tpu.dot_dimension_numbers<[1], [0], [0], [1], [0, 0, 1, 1], [], []>} : vector<16x32xbf16>, vector<32x256xbf16>, vector<16x256xf32> -> vector<16x256xf32>
    %6 = math.exp %5 : vector<16x256xf32>
    %7 = vector.extract_strided_slice %6 {offsets = [0, 0], sizes = [16, 128], strides = [1, 1]} : vector<16x256xf32> to vector<16x128xf32>
    %8 = vector.extract_strided_slice %6 {offsets = [0, 128], sizes = [16, 128], strides = [1, 1]} : vector<16x256xf32> to vector<16x128xf32>
    %9 = arith.addf %7, %8 : vector<16x128xf32>
    %c0_4 = arith.constant 0 : index
    %c0_5 = arith.constant 0 : index
    %10 = vector.load %arg6[%c0_4, %c0_5] : memref<16x128xf32, #tpu.memory_space<vmem>>, vector<16x128xf32>
    %11 = arith.addf %10, %9 : vector<16x128xf32>
    %c0_6 = arith.constant 0 : index
    %c0_7 = arith.constant 0 : index
    %12 = vector.load %arg6[%c0_6, %c0_7] : memref<16x128xf32, #tpu.memory_space<vmem>>, vector<16x128xf32>
    tpu.vector_store %arg6[%c0_6, %c0_7], %11 {strides = array<i32>} : memref<16x128xf32, #tpu.memory_space<vmem>>, vector<16x128xf32>,
    %c0_i32_8 = arith.constant 0 : i32
    %13 = arith.cmpi eq, %arg1, %c0_i32_8 : i32
    %14 = arith.extui %13 : i1 to i32
    %c0_i32_9 = arith.constant 0 : i32
    %15 = arith.cmpi ne, %14, %c0_i32_9 : i32
    scf.if %15 {
      %c0_10 = arith.constant 0 : index
      %c0_11 = arith.constant 0 : index
      %16 = vector.load %arg2[%c0_10, %c0_11] : memref<16x32xf32, #tpu.memory_space<vmem>>, vector<16x32xf32>
      %c0_12 = arith.constant 0 : index
      %c0_13 = arith.constant 0 : index
      %17 = vector.load %arg3[%c0_12, %c0_13] : memref<16x32xf32, #tpu.memory_space<vmem>>, vector<16x32xf32>
      %18 = arith.mulf %16, %16 : vector<16x32xf32>
      %cst_14 = arith.constant dense<0.000000e+00> : vector<16xf32>
      %19 = vector.multi_reduction <add>, %18, %cst_14 [1] : vector<16x32xf32> to vector<16xf32>
      %20 = vector.shape_cast %19 : vector<16xf32> to vector<16x1xf32>
      %cst_15 = arith.constant 9.99999996E-13 : f32
      %21 = vector.broadcast %cst_15 : f32 to vector<16x1xf32>
      %22 = arith.maximumf %20, %21 : vector<16x1xf32>
      %23 = math.rsqrt %22 : vector<16x1xf32>
      %24 = arith.mulf %17, %17 : vector<16x32xf32>
      %cst_16 = arith.constant dense<0.000000e+00> : vector<16xf32>
      %25 = vector.multi_reduction <add>, %24, %cst_16 [1] : vector<16x32xf32> to vector<16xf32>
      %26 = vector.shape_cast %25 : vector<16xf32> to vector<16x1xf32>
      %cst_17 = arith.constant 9.99999996E-13 : f32
      %27 = vector.broadcast %cst_17 : f32 to vector<16x1xf32>
      %28 = arith.maximumf %26, %27 : vector<16x1xf32>
      %29 = math.rsqrt %28 : vector<16x1xf32>
      %30 = vector.broadcast %23 : vector<16x1xf32> to vector<16x32xf32>
      %31 = arith.mulf %16, %30 : vector<16x32xf32>
      %32 = vector.broadcast %29 : vector<16x1xf32> to vector<16x32xf32>
      %33 = arith.mulf %17, %32 : vector<16x32xf32>
      %34 = arith.mulf %31, %33 : vector<16x32xf32>
      %cst_18 = arith.constant dense<0.000000e+00> : vector<16xf32>
      %35 = vector.multi_reduction <add>, %34, %cst_18 [1] : vector<16x32xf32> to vector<16xf32>
      %36 = vector.shape_cast %35 : vector<16xf32> to vector<16x1xf32>
      %cst_19 = arith.constant 1.0869565 : f32
      %37 = vector.broadcast %cst_19 : f32 to vector<16x1xf32>
      %38 = arith.mulf %36, %37 : vector<16x1xf32>
      %39 = math.exp %38 : vector<16x1xf32>
      %c0_20 = arith.constant 0 : index
      %c0_21 = arith.constant 0 : index
      %40 = vector.load %arg6[%c0_20, %c0_21] : memref<16x128xf32, #tpu.memory_space<vmem>>, vector<16x128xf32>
      %cst_22 = arith.constant dense<0.000000e+00> : vector<16xf32>
      %41 = vector.multi_reduction <add>, %40, %cst_22 [1] : vector<16x128xf32> to vector<16xf32>
      %42 = vector.shape_cast %41 : vector<16xf32> to vector<16x1xf32>
      %cst_23 = arith.constant 2.480000e+02 : f32
      %43 = vector.broadcast %cst_23 : f32 to vector<16x1xf32>
      %44 = arith.subf %42, %43 : vector<16x1xf32>
      %cst_24 = arith.constant 1.250000e-01 : f32
      %45 = vector.broadcast %cst_24 : f32 to vector<16x1xf32>
      %46 = arith.mulf %44, %45 : vector<16x1xf32>
      %47 = arith.addf %39, %46 : vector<16x1xf32>
      %48 = math.log %47 : vector<16x1xf32>
      %49 = arith.subf %48, %38 : vector<16x1xf32>
      %c0_25 = arith.constant 0 : index
      %c0_26 = arith.constant 0 : index
      %50 = vector.load %arg5[%c0_25, %c0_26] : memref<16x1xf32, #tpu.memory_space<vmem>>, vector<16x1xf32>
      tpu.vector_store %arg5[%c0_25, %c0_26], %49 {strides = array<i32>} : memref<16x1xf32, #tpu.memory_space<vmem>>, vector<16x1xf32>,
    } else {
    }
    return
  }
  func.func @transform_0(%arg0: i32, %arg1: i32) -> (i32, i32) {
    %c0_i32 = arith.constant 0 : i32
    %c0_i32_0 = arith.constant 0 : i32
    return %arg0, %c0_i32 : i32, i32
  }
  func.func @transform_1(%arg0: i32, %arg1: i32) -> (i32, i32) {
    %c0_i32 = arith.constant 0 : i32
    %c0_i32_0 = arith.constant 0 : i32
    return %arg0, %c0_i32 : i32, i32
  }
  func.func @transform_2(%arg0: i32, %arg1: i32) -> (i32, i32) {
    %c0_i32 = arith.constant 0 : i32
    %c0_i32_0 = arith.constant 0 : i32
    return %c0_i32, %arg1 : i32, i32
  }
  func.func @transform_3(%arg0: i32, %arg1: i32) -> (i32, i32) {
    %c0_i32 = arith.constant 0 : i32
    %c0_i32_0 = arith.constant 0 : i32
    return %arg0, %c0_i32 : i32, i32
  }
}

</mosaic_0001>

<bundles_post_ra>
// kernel: tpu_custom_call.1
= control target key start
LH: loop header
LB: loop body
LE: loop exit
PB: predicated region body
PF: predicated region fallthrough
CT: control target
= control target key end

     0   :  { %8 = vsyncpa [#allocation5], 0  ;;  %s462_s0 = inlined_call_operand.hbm [shape: f32[16,32], index: 0, kind: input, shape index: {}]   ;;  %s463_s1 = inlined_call_operand.hbm [shape: f32[16,32], index: 1, kind: input, shape index: {}]   ;;  %s464_s2 = inlined_call_operand.hbm [shape: bf16[32,256], index: 2, kind: input, shape index: {}]   ;;  %s465_s3 = inlined_call_operand.vmem [shape: f32[16,1], index: 3, kind: output, shape index: {}]  }
   0x1   :  { %9 = vsyncpa [#allocation7], 0  ;;  %s364_s12 = smov [#allocation6]   ;;  %s365_s14 = smov [#allocation4]  }
   0x2   :  { %s27_s13 = sshll.u32 %s364_s12, 4  ;;  %s15_s15 = sshll.u32 %s365_s14, 4  ;;  %s28_s13 = int_to_ptr.vmem [resolvable:$true] %s27_s13  ;;  %s390_s15 = int_to_ptr.vmem [resolvable:$true] %s15_s15 }
   0x3   :  { %s294_s18 = scalar_lea.hbm %s463_s1, 256 }
   0x4   :  { %p295_p0 = scmp.ne.s32.totalorder %s463_s1, %s294_s18  ;;  %p298_p1 = scmp.lt.u32.totalorder %s294_s18, %s463_s1 }
   0x6   :  { %p300_p2 = pnand %p298_p1, %p295_p0 }
   0x8   :  { %303 = shalt.err (!%p300_p2)
}
   0x9   :  { %s304_s23 = scalar_lea.vmem %s28_s13, 256  ;;  %p309_p4 = scmp.lt.s32.totalorder %s28_s13, %s28_s13 }
   0xa   :  { %p305_p3 = scmp.ne.s32.totalorder %s28_s13, %s304_s23  ;;  %p310_p5 = scmp.lt.s32.totalorder %s304_s23, %s304_s23 }
   0xc   :  { %p311_p6 = por %p310_p5, %p309_p4 }
   0xe   :  { %p312_p7 = pnand %p311_p6, %p305_p3 }
  0x10   :  { %315 = shalt.err (!%p312_p7)
}
  0x11   :  { %s366_s24 = smov 128   ;;  %s367_s25 = smov 8  }
  0x12   :  { %33 = dma.hbm_to_vmem [thread:$0]  %s463_s1, 256, %s28_s13, [#allocation7], %s366_s24, %s366_s24, %s367_s25  }
  0x13   :  { %s316_s30 = scalar_lea.hbm %s462_s0, 256 }
  0x14   :  { %p317_p8 = scmp.ne.s32.totalorder %s462_s0, %s316_s30  ;;  %p320_p9 = scmp.lt.u32.totalorder %s316_s30, %s462_s0 }
  0x16   :  { %p322_p10 = pnand %p320_p9, %p317_p8 }
  0x18   :  { %325 = shalt.err (!%p322_p10)
}
  0x19   :  { %s326_s8 = scalar_lea.vmem %s390_s15, 256  ;;  %p331_p12 = scmp.lt.s32.totalorder %s390_s15, %s390_s15 }
  0x1a   :  { %p327_p11 = scmp.ne.s32.totalorder %s390_s15, %s326_s8  ;;  %p332_p13 = scmp.lt.s32.totalorder %s326_s8, %s326_s8 }
  0x1c   :  { %p333_p0 = por %p332_p13, %p331_p12 }
  0x1e   :  { %p334_p1 = pnand %p333_p0, %p327_p11 }
  0x20   :  { %337 = shalt.err (!%p334_p1)
}
  0x21   :  { %21 = dma.hbm_to_vmem [thread:$0]  %s462_s0, 256, %s390_s15, [#allocation5], %s366_s24, %s366_s24, %s367_s25  }
  0x22   :  { %s368_s10 = smov [#allocation8]   ;;  %s338_s14 = scalar_lea.hbm %s464_s2, 512 }
  0x23   :  { %s39_s11 = sshll.u32 %s368_s10, 4  ;;  %p339_p2 = scmp.ne.s32.totalorder %s464_s2, %s338_s14  ;;  %s40_s11 = int_to_ptr.vmem [resolvable:$true] %s39_s11 }
  0x24   :  { %p342_p3 = scmp.lt.u32.totalorder %s338_s14, %s464_s2 }
  0x26   :  { %p344_p4 = pnand %p342_p3, %p339_p2 }
  0x28   :  { %347 = shalt.err (!%p344_p4)
}
  0x29   :  { %s348_s20 = scalar_lea.vmem %s40_s11, 512  ;;  %p353_p6 = scmp.lt.s32.totalorder %s40_s11, %s40_s11 }
  0x2a   :  { %p349_p5 = scmp.ne.s32.totalorder %s40_s11, %s348_s20  ;;  %p354_p7 = scmp.lt.s32.totalorder %s348_s20, %s348_s20 }
  0x2c   :  { %p355_p8 = por %p354_p7, %p353_p6 }
  0x2e   :  { %p356_p9 = pnand %p355_p8, %p349_p5 }
  0x30   :  { %359 = shalt.err (!%p356_p9)
}
  0x31   :  { %45 = dma.hbm_to_vmem [thread:$0]  %s464_s2, 512, %s40_s11, [#allocation7], %s366_s24, %s366_s24, %s367_s25  }
  0x32   :  { %360 = dma.done.wait [#allocation5], 256  }
  0x33   :  { %361 = vsyncadd [#allocation5], 4294967040 }
  0x34   :  { %362 = dma.done.wait [#allocation7], 768  }
  0x35   :  { %363 = vsyncadd [#allocation7], 4294966528  ;;  %v62_v0 = vld [vmem:[#allocation4] sm:$0xff]  ;;  %vm66_vm0 = vcmask 261120   ;;  %v442_v1 = vld [vmem:[#allocation4 + $0x8] sm:$0xff]  ;;  %v369_v10 = vmov 0  }
  0x36   :  { %v64_v2 = vmul.f32 %v62_v0, %v62_v0  ;;  %v65_v3 = vmul.f32 %v442_v1, %v442_v1  ;;  %v260_v6 = vld [vmem:[#allocation8 + $0x4] ss:$8 sps:$4 sm:$0xff]   ;;  %v262_v7 = vld [vmem:[#allocation8] ss:$8 sps:$4 sm:$0xff]   ;;  %v263_v8 = vld [vmem:[#allocation8 + $0x14] ss:$8 sps:$4 sm:$0xff]   ;;  %144 = vmatprep.mubr.bf16.mxu0 %v369_v10 }
  0x37   :  { %112 = vmatprep.subr.bf16.mxu0 %v260_v6  ;;  %v265_v9 = vld [vmem:[#allocation8 + $0x10] ss:$8 sps:$4 sm:$0xff]   ;;  %vm238_vm1 = vcmask 7168  }
  0x38   :  { %v67_v4 = vsel %vm66_vm0, %v64_v2, 0.0  ;;  %v70_v5 = vsel %vm66_vm0, %v65_v3, 0.0  ;;  %113 = vmatpush1.bf16.msra.mxu0 %v262_v7  ;;  %v176_v11 = vld [vmem:[#allocation6] sm:$0xff]  ;;  %v177_v12 = vld [vmem:[#allocation6 + $0x8] sm:$0xff] }
  0x39   :  { %68 = vadd.xlane.f32.xlu0 %v67_v4  ;;  %181 = vadd.xlane.f32.xlu1 %v67_v4  ;;  %v190_v13 = vmul.f32 %v176_v11, %v176_v11  ;;  %v191_v14 = vmul.f32 %v177_v12, %v177_v12 }
  0x3a   :  { %114 = vmatprep.subr.bf16.mxu0 %v263_v8 }
  0x3b   :  { %v192_v15 = vsel %vm66_vm0, %v190_v13, 0.0  ;;  %v195_v16 = vsel %vm66_vm0, %v191_v14, 0.0 }
  0x3c   :  { %115 = vmatpush1.bf16.msra.mxu0 %v265_v9 }
  0x3d   :  { %71 = vadd.xlane.f32.xlu0 %v70_v5  ;;  %184 = vadd.xlane.f32.xlu1 %v70_v5 }
  0x41   :  { %193 = vadd.xlane.f32.xlu0 %v192_v15  ;;  %196 = vadd.xlane.f32.xlu1 %v195_v16 }
  0xc6   :  { %v69_v17 = vpop.xlane.xlu0 %68  ;;  %v182_v29 = vpop.xlane.xlu1 %181 }
  0xc7   :  { %v73_v18 = vmax.f32 %v69_v17, 1e-12  ;;  %v186_v32 = vmax.f32 %v182_v29, 1e-12 }
  0xc9   :  { %266 = vrsqrt.f32 %v73_v18 }
  0xca   :  { %v72_v19 = vpop.xlane.xlu0 %71  ;;  %v185_v30 = vpop.xlane.xlu1 %184 }
  0xcb   :  { %v74_v20 = vmax.f32 %v72_v19, 1e-12  ;;  %v187_v35 = vmax.f32 %v185_v30, 1e-12 }
  0xcd   :  { %268 = vrsqrt.f32 %v74_v20 }
  0xce   :  { %v194_v31 = vpop.xlane.xlu0 %193  ;;  %v197_v34 = vpop.xlane.xlu1 %196  ;;  %270 = vrsqrt.f32 %v186_v32 }
  0xcf   :  { %v198_v33 = vmax.f32 %v194_v31, 1e-12  ;;  %v199_v36 = vmax.f32 %v197_v34, 1e-12 }
  0xd1   :  { %272 = vrsqrt.f32 %v198_v33 }
  0xd2   :  { %274 = vrsqrt.f32 %v187_v35 }
  0xd3   :  { %v267_v21 = vpop.eup %266  ;;  %276 = vrsqrt.f32 %v199_v36 }
  0xd4   :  { %v77_v22 = vmul.f32 1.0869565, %v267_v21 }
  0xd6   :  { %v79_v25 = vmul.f32 %v77_v22, %v62_v0 }
  0xd7   :  { %v269_v23 = vpop.eup %268 }
  0xd8   :  { %v78_v24 = vmul.f32 1.0869565, %v269_v23  ;;  %v271_v37 = vpop.eup %270 }
  0xd9   :  { %v202_v40 = vmul.f32 %v271_v37, %v62_v0 }
  0xda   :  { %v80_v26 = vmul.f32 %v78_v24, %v442_v1 }
  0xdb   :  { %v273_v38 = vpop.eup %272 }
  0xdc   :  { %v81_v27 = vpack.c.bf16 %v80_v26, %v79_v25  ;;  %v275_v39 = vpop.eup %274  ;;  %v204_v41 = vmul.f32 %v273_v38, %v176_v11 }
  0xdd   :  { %v277_v42 = vpop.eup %276  ;;  %v203_v45 = vmul.f32 %v275_v39, %v442_v1 }
  0xde   :  { %82 = vst.msk [vmem:[#allocation3] sm:$0xff] %vm66_vm0, %v81_v27  ;;  %v206_v43 = vmul.f32 %v204_v41, %v202_v40  ;;  %v205_v46 = vmul.f32 %v277_v42, %v177_v12 }
  0xe0   :  { %v208_v44 = vsel %vm66_vm0, %v206_v43, 0.0  ;;  %v207_v47 = vmul.f32 %v205_v46, %v203_v45 }
  0xe1   :  { %209 = vadd.xlane.f32.xlu0 %v208_v44 }
  0xe2   :  { %v211_v48 = vsel %vm66_vm0, %v207_v47, 0.0 }
  0xe3   :  { %212 = vadd.xlane.f32.xlu1 %v211_v48 }
  0xe5   :  { %v83_v28 = vld [vmem:[#allocation3] sm:$0xff] }
  0xe6   :  { %251 = vmatmul.mubr.msk.bf16.vlgmr.msra.gmra.mrb[0].mxu0 %vm66_vm0, %v83_v28 }
 0x16e   :  { %v210_v63 = vpop.xlane.xlu0 %209 }
 0x16f   :  { %v214_v1 = vmul.f32 1.0869565, %v210_v63 }
 0x170   :  { %v213_v0 = vpop.xlane.xlu1 %212 }
 0x171   :  { %v215_v2 = vmul.f32 1.0869565, %v213_v0  ;;  %v216_v3 = vmul.f32 1.442695, %v214_v1 }
 0x173   :  { %v218_v4 = vmul.f32 1.442695, %v215_v2 }
 0x1b9   :  { %v146_v49 = vpop.f32.mrb[0].mxu0 }
 0x1ba   :  { %v155_v50 = vmul.f32 1.442695, %v146_v49  ;;  %v148_v51 = vpop.f32.mrb[1].mxu0 }
 0x1bb   :  { %v157_v52 = vmul.f32 1.442695, %v148_v51  ;;  %v150_v53 = vpop.f32.mrb[2].mxu0 }
 0x1bc   :  { %278 = vpow2.f32 %v155_v50  ;;  %v159_v54 = vmul.f32 1.442695, %v150_v53  ;;  %v152_v55 = vpop.f32.mrb[3].mxu0 }
 0x1bd   :  { %280 = vpow2.f32 %v157_v52  ;;  %v161_v56 = vmul.f32 1.442695, %v152_v55 }
 0x1be   :  { %282 = vpow2.f32 %v159_v54 }
 0x1bf   :  { %284 = vpow2.f32 %v161_v56 }
 0x1c0   :  { %286 = vpow2.f32 %v216_v3 }
 0x1c1   :  { %288 = vpow2.f32 %v218_v4 }
 0x1c6   :  { %v279_v57 = vpop.eup %278 }
 0x1c7   :  { %v281_v58 = vpop.eup %280 }
 0x1c8   :  { %v283_v59 = vpop.eup %282  ;;  %v163_v60 = vadd.f32 %v281_v58, %v279_v57 }
 0x1c9   :  { %v285_v61 = vpop.eup %284 }
 0x1ca   :  { %222 = vadd.xlane.f32.xlu0 %v163_v60  ;;  %v164_v62 = vadd.f32 %v285_v61, %v283_v59  ;;  %v287_v10 = vpop.eup %286 }
 0x1cb   :  { %v289_v13 = vpop.eup %288 }
 0x1cc   :  { %224 = vadd.xlane.f32.xlu1 %v164_v62 }
 0x257   :  { %v223_v5 = vpop.xlane.xlu0 %222 }
 0x258   :  { %v252_v6 = vadd.f32 -248.0, %v223_v5 }
 0x259   :  { %v225_v7 = vpop.xlane.xlu1 %224 }
 0x25a   :  { %v228_v8 = vmul.f32 0.125, %v252_v6  ;;  %v253_v9 = vadd.f32 -248.0, %v225_v7 }
 0x25c   :  { %v230_v11 = vadd.f32 %v287_v10, %v228_v8  ;;  %v229_v12 = vmul.f32 0.125, %v253_v9 }
 0x25e   :  { %290 = vlog2.f32 %v230_v11  ;;  %v231_v14 = vadd.f32 %v289_v13, %v229_v12 }
 0x260   :  { %292 = vlog2.f32 %v231_v14 }
 0x268   :  { %v291_v15 = vpop.eup %290 }
 0x269   :  { %v233_v16 = vmul.f32 0.6931472, %v291_v15 }
 0x26a   :  { %v293_v17 = vpop.eup %292 }
 0x26b   :  { %v236_v18 = vsub.f32 %v233_v16, %v214_v1  ;;  %v235_v19 = vmul.f32 0.6931472, %v293_v17 }
 0x26d   :  { %239 = vst.msk [vmem:[%s465_s3] sm:$0xff] %vm238_vm1, %v236_v18  ;;  %v237_v20 = vsub.f32 %v235_v19, %v215_v2 }
 0x26f   :  { %240 = vst.msk [vmem:[%s465_s3 + $0x8] sm:$0xff] %vm238_vm1, %v237_v20 }
 0x270   :  { %245 = vsyncpa [#allocation5], 1 }
 0x271   :  { %246 = vsyncpa [#allocation7], 1 }

</bundles_post_ra>
